<compile_context>
chip_gen: v7x
topology: tpu7x:2x2x1
jax: 0.10.0
libtpu: 0.0.40
codegen_flags: <defaults>
</compile_context>

<pallas_src>
import math

import jax
import jax.numpy as jnp
import numpy as np
from jax.experimental import pallas as pl
from jax.experimental.pallas import tpu as pltpu

SELU_ALPHA = 1.6732632423543772
SELU_SCALE = 1.0507009873554805


# --------------------------------------------------------------------------
# Weight preprocessing: ConvTranspose2d(k=4, s=2, p=1) as banded row matmuls.
#
#   out[2i+p, 2j+q, co] = sum_{dh,dw,ci} xpad[i+p+dh, j+q+dw, ci]
#                                        * w[ci, co, 3-2dh-p, 3-2dw-q] + b[co]
#
# With padded NHWC rows flattened as (b*Cin + ci) and output rows flattened as
# ((2j+q)*Cout + co), the map from ONE padded input row to ONE interleaved
# output row (for parity p and vertical tap dh) is a banded matrix Wb[p, dh].
# --------------------------------------------------------------------------
def _banded_weights(w, b, W):
    """w: (Cin, Cout, 4, 4) PyTorch layout; b: (Cout,).  Returns
    Wb (2, 2, (W+2)*Cin, 2W*Cout) and bias tiled per output row (1, 2W*Cout)."""
    Cin, Cout = w.shape[0], w.shape[1]
    # static selector S[p, dh, b, kh, kw, j, q]
    S = np.zeros((2, 2, W + 2, 4, 4, W, 2), np.float32)
    for p in range(2):
        for dh in range(2):
            for q in range(2):
                for dw in range(2):
                    for j in range(W):
                        S[p, dh, j + q + dw,
                          3 - 2 * dh - p, 3 - 2 * dw - q, j, q] = 1.0
    Wb = jnp.einsum("pdbkljq,iokl->pdbijqo", jnp.asarray(S), w)
    Wb = Wb.reshape(2, 2, (W + 2) * Cin, 2 * W * Cout)
    brow = jnp.tile(b, 2 * W).reshape(1, 2 * W * Cout)
    return Wb, brow


def _selu(x):
    # Numerically-stable expm1 via Kahan's trick (rounding of u = exp(x)
    # cancels between (u-1) and log(u)); avoids relying on an expm1 primitive
    # lowering while fixing the exp(x)-1 cancellation flagged in review.
    neg = jnp.minimum(x, 0.0)
    u = jnp.exp(neg)
    em1 = jnp.where(u == 1.0, neg, (u - 1.0) * neg / jnp.log(u))
    return SELU_SCALE * jnp.where(x > 0.0, x, SELU_ALPHA * em1)


# --------------------------------------------------------------------------
# Fused decoder kernel: one grid step = one batch element through all layers.
# --------------------------------------------------------------------------
def _make_decoder_kernel(dims):
    """dims: tuple of per-layer (H, W, Cin, Cout); each layer upsamples 2x."""
    L = len(dims)

    def kernel(*refs):
        x_ref = refs[0]
        layer_refs = refs[1:1 + 2 * L]          # (Wb, bias_row) per layer
        out_ref = refs[1 + 2 * L]               # (1, 2H_L, 2W_L*Cout_L) NHWC-flat
        bufs = refs[2 + 2 * L:]                 # per-layer padded NHWC-flat input

        # Padding rings must be zero; interiors are fully overwritten below.
        for buf in bufs:
            buf[...] = jnp.zeros_like(buf)

        # Stage this batch element's input into layer 0's padded buffer.
        H0, W0, C0, _ = dims[0]
        bufs[0][pl.ds(1, H0), pl.ds(C0, W0 * C0)] = x_ref[0].astype(jnp.float32)

        for l, (H, W, Cin, Cout) in enumerate(dims):
            Wb_ref = layer_refs[2 * l]          # (2, 2, (W+2)*Cin, 2W*Cout)
            brow = layer_refs[2 * l + 1][...]   # (1, 2W*Cout)
            buf = bufs[l]
            last = l == L - 1
            for p in range(2):                  # output-row parity
                # All output rows 2i+p of this layer: two banded MXU matmuls
                # (one per vertical tap dh), one bias add, one SELU.
                acc = jnp.dot(buf[pl.ds(p, H), :], Wb_ref[p, 0],
                              preferred_element_type=jnp.float32)
                acc = acc + jnp.dot(buf[pl.ds(p + 1, H), :], Wb_ref[p, 1],
                                    preferred_element_type=jnp.float32)
                y = _selu(acc + brow)           # (H, 2W*Cout)
                if last:
                    y = y.astype(out_ref.dtype)
                    # interleave rows 2i+p of the full-res output in place
                    for i in range(H):
                        out_ref[0, pl.ds(2 * i + p, 1), :] = y[i:i + 1, :]
                else:
                    # scatter rows 2i+p into the next layer's padded buffer
                    # (VMEM-resident; never goes to HBM)
                    nbuf = bufs[l + 1]
                    for i in range(H):
                        nbuf[pl.ds(1 + 2 * i + p, 1),
                             pl.ds(Cout, 2 * W * Cout)] = y[i:i + 1, :]

    return kernel


def decoder_forward(x_nchw, params):
    """Decoder.forward — input/output in NCHW like the PyTorch module."""
    N, C0, H0, W0 = x_nchw.shape

    dims = []
    cin, h, w = C0, H0, W0
    for (wt, _) in params:
        cout = wt.shape[1]
        dims.append((h, w, cin, cout))
        cin, h, w = cout, 2 * h, 2 * w
    Hout, Wout, Cfin = h, w, cin
    dims = tuple(dims)

    # Interface layout glue only (tiny, fused by XLA): NCHW -> NHWC-flat rows.
    x_flat = jnp.transpose(x_nchw, (0, 2, 3, 1)).reshape(N, H0, W0 * C0)

    inputs = [x_flat]
    in_specs = [pl.BlockSpec((1, H0, W0 * C0), lambda n: (n, 0, 0))]
    for (H, W, Cin, Cout), (wt, bias) in zip(dims, params):
        Wb, brow = _banded_weights(wt, bias, W)
        inputs += [Wb, brow]
        in_specs += [
            pl.BlockSpec(Wb.shape, lambda n: (0, 0, 0, 0)),
            pl.BlockSpec(brow.shape, lambda n: (0, 0)),
        ]

    scratch_shapes = [
        pltpu.VMEM((H + 2, (W + 2) * Cin), jnp.float32)
        for (H, W, Cin, Cout) in dims
    ]

    out = pl.pallas_call(
        _make_decoder_kernel(dims),
        out_shape=jax.ShapeDtypeStruct((N, Hout, Wout * Cfin), x_nchw.dtype),
        grid=(N,),
        in_specs=in_specs,
        out_specs=pl.BlockSpec((1, Hout, Wout * Cfin), lambda n: (n, 0, 0)),
        scratch_shapes=scratch_shapes,
        compiler_params=pltpu.CompilerParams(
            dimension_semantics=("parallel",)),
    )(*inputs)

    # Interface layout glue only: NHWC-flat -> NCHW (phase interleave was
    # already done inside the kernel by store addressing).
    return jnp.transpose(out.reshape(N, Hout, Wout, Cfin), (0, 3, 1, 2))


def init_params(key, dim, scale):
    """Deterministic synthetic parameters (shapes match the PyTorch module)."""
    params = []
    cin = dim
    for _ in range(scale):
        key, kw, kb = jax.random.split(key, 3)
        w = 0.2 * jax.random.normal(kw, (cin, 3, 4, 4), jnp.float32)
        b = 0.1 * jax.random.normal(kb, (3,), jnp.float32)
        params.append((w, b))
        cin = 3
    return params


# ----------------------- pure-JAX reference (for checking) -----------------
def _convt_ref(x_nchw, w, b):
    # ConvTranspose2d(stride=2, pad=1, k=4) == conv with lhs_dilation=2, pad=2,
    # flipped kernel with in/out channels swapped.
    w_conv = jnp.flip(w, axis=(2, 3)).transpose(1, 0, 2, 3)   # (Cout, Cin, 4, 4)
    y = jax.lax.conv_general_dilated(
        x_nchw, w_conv, window_strides=(1, 1),
        padding=[(2, 2), (2, 2)], lhs_dilation=(2, 2),
        dimension_numbers=("NCHW", "OIHW", "NCHW"))
    return y + b.reshape(1, -1, 1, 1)


def decoder_ref(x_nchw, params):
    x = x_nchw
    for (w, b) in params:
        x = _convt_ref(x, w, b)
        x = SELU_SCALE * jnp.where(
            x > 0.0, x, SELU_ALPHA * jnp.expm1(jnp.minimum(x, 0.0)))
    return x


if __name__ == "__main__":
    img_size, num_patches, dim = 16, 4, 8
    scale = int(math.log2(img_size / num_patches))    # = 2 -> two deconv layers
    batch = 2

    key = jax.random.PRNGKey(0)
    key, kx = jax.random.split(key)
    # PyTorch-style NCHW input: (batch, dim, num_patches, num_patches)
    x = jax.random.normal(kx, (batch, dim, num_patches, num_patches), jnp.float32)
    params = init_params(key, dim, scale)

    fwd = jax.jit(decoder_forward)
    out = jax.block_until_ready(fwd(x, params))

    assert out.shape == (batch, 3, img_size, img_size), out.shape
    ref = decoder_ref(x, params)
    np.testing.assert_allclose(np.asarray(out), np.asarray(ref),
                               rtol=1e-4, atol=1e-4)
    print("KERNEL_OK")
</pallas_src>

<mosaic_0001>
module attributes {stable_mosaic.version = 11 : i64} {
  func.func @kernel(%arg0: i32, %arg1: memref<1x4x32xf32, #tpu.memory_space<vmem>>, %arg2: memref<2x2x48x24xf32, #tpu.memory_space<vmem>>, %arg3: memref<1x24xf32, #tpu.memory_space<vmem>>, %arg4: memref<2x2x30x48xf32, #tpu.memory_space<vmem>>, %arg5: memref<1x48xf32, #tpu.memory_space<vmem>>, %arg6: memref<1x16x48xf32, #tpu.memory_space<vmem>>, %arg7: memref<6x48xf32, #tpu.memory_space<vmem>>, %arg8: memref<10x30xf32, #tpu.memory_space<vmem>>) attributes {dimension_semantics = [#tpu.dimension_semantics<parallel>], iteration_bounds = array<i64: 2>, scalar_prefetch = 0 : i64, scratch_operands = 2 : i64, tpu.core_type = #tpu.core_type<tc>, window_params = [{transform_indices = @transform_0, window_bounds = array<i64: 1, 4, 32>}, {pipeline_mode = #tpu.pipeline_mode<synchronous>, transform_indices = @transform_1, window_bounds = array<i64: 2, 2, 48, 24>}, {pipeline_mode = #tpu.pipeline_mode<synchronous>, transform_indices = @transform_2, window_bounds = array<i64: 1, 24>}, {pipeline_mode = #tpu.pipeline_mode<synchronous>, transform_indices = @transform_3, window_bounds = array<i64: 2, 2, 30, 48>}, {pipeline_mode = #tpu.pipeline_mode<synchronous>, transform_indices = @transform_4, window_bounds = array<i64: 1, 48>}, {transform_indices = @transform_5, window_bounds = array<i64: 1, 16, 48>}]} {
    %cst = arith.constant 0.000000e+00 : f32
    %0 = vector.broadcast %cst : f32 to vector<6x48xf32>
    %c0 = arith.constant 0 : index
    %c0_0 = arith.constant 0 : index
    %1 = vector.load %arg7[%c0, %c0_0] : memref<6x48xf32, #tpu.memory_space<vmem>>, vector<6x48xf32>
    tpu.vector_store %arg7[%c0, %c0_0], %0 {strides = array<i32>} : memref<6x48xf32, #tpu.memory_space<vmem>>, vector<6x48xf32>,
    %cst_1 = arith.constant 0.000000e+00 : f32
    %2 = vector.broadcast %cst_1 : f32 to vector<10x30xf32>
    %c0_2 = arith.constant 0 : index
    %c0_3 = arith.constant 0 : index
    %3 = vector.load %arg8[%c0_2, %c0_3] : memref<10x30xf32, #tpu.memory_space<vmem>>, vector<10x30xf32>
    tpu.vector_store %arg8[%c0_2, %c0_3], %2 {strides = array<i32>} : memref<10x30xf32, #tpu.memory_space<vmem>>, vector<10x30xf32>,
    %c0_4 = arith.constant 0 : index
    %c0_5 = arith.constant 0 : index
    %c0_6 = arith.constant 0 : index
    %4 = vector.load %arg1[%c0_4, %c0_5, %c0_6] : memref<1x4x32xf32, #tpu.memory_space<vmem>>, vector<1x4x32xf32>
    %5 = vector.shape_cast %4 : vector<1x4x32xf32> to vector<4x32xf32>
    %c1 = arith.constant 1 : index
    %c8 = arith.constant 8 : index
    %6 = vector.load %arg7[%c1, %c8] : memref<6x48xf32, #tpu.memory_space<vmem>>, vector<4x32xf32>
    tpu.vector_store %arg7[%c1, %c8], %5 {strides = array<i32>} : memref<6x48xf32, #tpu.memory_space<vmem>>, vector<4x32xf32>,
    %c0_7 = arith.constant 0 : index
    %c0_8 = arith.constant 0 : index
    %7 = vector.load %arg3[%c0_7, %c0_8] : memref<1x24xf32, #tpu.memory_space<vmem>>, vector<1x24xf32>
    %c0_9 = arith.constant 0 : index
    %c0_10 = arith.constant 0 : index
    %8 = vector.load %arg7[%c0_9, %c0_10] : memref<6x48xf32, #tpu.memory_space<vmem>>, vector<4x48xf32>
    %c0_11 = arith.constant 0 : index
    %c0_12 = arith.constant 0 : index
    %c0_13 = arith.constant 0 : index
    %c0_14 = arith.constant 0 : index
    %9 = vector.load %arg2[%c0_11, %c0_12, %c0_13, %c0_14] : memref<2x2x48x24xf32, #tpu.memory_space<vmem>>, vector<1x1x48x24xf32>
    %10 = vector.shape_cast %9 : vector<1x1x48x24xf32> to vector<48x24xf32>
    %cst_15 = arith.constant dense<0.000000e+00> : vector<4x24xf32>
    %11 = tpu.matmul %8, %10, %cst_15 {dimension_numbers = #tpu.dot_dimension_numbers<[1], [0], [0], [1], [0, 0, 1, 1], [], []>} : vector<4x48xf32>, vector<48x24xf32>, vector<4x24xf32> -> vector<4x24xf32>
    %c1_16 = arith.constant 1 : index
    %c0_17 = arith.constant 0 : index
    %12 = vector.load %arg7[%c1_16, %c0_17] : memref<6x48xf32, #tpu.memory_space<vmem>>, vector<4x48xf32>
    %c0_18 = arith.constant 0 : index
    %c1_19 = arith.constant 1 : index
    %c0_20 = arith.constant 0 : index
    %c0_21 = arith.constant 0 : index
    %13 = vector.load %arg2[%c0_18, %c1_19, %c0_20, %c0_21] : memref<2x2x48x24xf32, #tpu.memory_space<vmem>>, vector<1x1x48x24xf32>
    %14 = vector.shape_cast %13 : vector<1x1x48x24xf32> to vector<48x24xf32>
    %cst_22 = arith.constant dense<0.000000e+00> : vector<4x24xf32>
    %15 = tpu.matmul %12, %14, %cst_22 {dimension_numbers = #tpu.dot_dimension_numbers<[1], [0], [0], [1], [0, 0, 1, 1], [], []>} : vector<4x48xf32>, vector<48x24xf32>, vector<4x24xf32> -> vector<4x24xf32>
    %16 = arith.addf %11, %15 : vector<4x24xf32>
    %17 = vector.broadcast %7 : vector<1x24xf32> to vector<4x24xf32>
    %18 = arith.addf %16, %17 : vector<4x24xf32>
    %cst_23 = arith.constant 0.000000e+00 : f32
    %19 = vector.broadcast %cst_23 : f32 to vector<4x24xf32>
    %20 = arith.minimumf %18, %19 : vector<4x24xf32>
    %21 = math.exp %20 : vector<4x24xf32>
    %cst_24 = arith.constant 1.000000e+00 : f32
    %22 = vector.broadcast %cst_24 : f32 to vector<4x24xf32>
    %23 = arith.cmpf oeq, %21, %22 : vector<4x24xf32>
    %cst_25 = arith.constant 1.000000e+00 : f32
    %24 = vector.broadcast %cst_25 : f32 to vector<4x24xf32>
    %25 = arith.subf %21, %24 : vector<4x24xf32>
    %26 = arith.mulf %25, %20 : vector<4x24xf32>
    %27 = math.log %21 : vector<4x24xf32>
    %28 = arith.divf %26, %27 : vector<4x24xf32>
    %29 = arith.select %23, %20, %28 : vector<4x24xi1>, vector<4x24xf32>
    %cst_26 = arith.constant 0.000000e+00 : f32
    %30 = vector.broadcast %cst_26 : f32 to vector<4x24xf32>
    %31 = arith.cmpf ogt, %18, %30 : vector<4x24xf32>
    %cst_27 = arith.constant 1.67326319 : f32
    %32 = vector.broadcast %cst_27 : f32 to vector<4x24xf32>
    %33 = arith.mulf %32, %29 : vector<4x24xf32>
    %34 = arith.select %31, %18, %33 : vector<4x24xi1>, vector<4x24xf32>
    %cst_28 = arith.constant 1.05070102 : f32
    %35 = vector.broadcast %cst_28 : f32 to vector<4x24xf32>
    %36 = arith.mulf %35, %34 : vector<4x24xf32>
    %37 = vector.extract_strided_slice %36 {offsets = [0, 0], sizes = [1, 24], strides = [1, 1]} : vector<4x24xf32> to vector<1x24xf32>
    %c1_29 = arith.constant 1 : index
    %c3 = arith.constant 3 : index
    %38 = vector.load %arg8[%c1_29, %c3] : memref<10x30xf32, #tpu.memory_space<vmem>>, vector<1x24xf32>
    tpu.vector_store %arg8[%c1_29, %c3], %37 {strides = array<i32>} : memref<10x30xf32, #tpu.memory_space<vmem>>, vector<1x24xf32>,
    %39 = vector.extract_strided_slice %36 {offsets = [1, 0], sizes = [1, 24], strides = [1, 1]} : vector<4x24xf32> to vector<1x24xf32>
    %c3_30 = arith.constant 3 : index
    %c3_31 = arith.constant 3 : index
    %40 = vector.load %arg8[%c3_30, %c3_31] : memref<10x30xf32, #tpu.memory_space<vmem>>, vector<1x24xf32>
    tpu.vector_store %arg8[%c3_30, %c3_31], %39 {strides = array<i32>} : memref<10x30xf32, #tpu.memory_space<vmem>>, vector<1x24xf32>,
    %41 = vector.extract_strided_slice %36 {offsets = [2, 0], sizes = [1, 24], strides = [1, 1]} : vector<4x24xf32> to vector<1x24xf32>
    %c5 = arith.constant 5 : index
    %c3_32 = arith.constant 3 : index
    %42 = vector.load %arg8[%c5, %c3_32] : memref<10x30xf32, #tpu.memory_space<vmem>>, vector<1x24xf32>
    tpu.vector_store %arg8[%c5, %c3_32], %41 {strides = array<i32>} : memref<10x30xf32, #tpu.memory_space<vmem>>, vector<1x24xf32>,
    %43 = vector.extract_strided_slice %36 {offsets = [3, 0], sizes = [1, 24], strides = [1, 1]} : vector<4x24xf32> to vector<1x24xf32>
    %c7 = arith.constant 7 : index
    %c3_33 = arith.constant 3 : index
    %44 = vector.load %arg8[%c7, %c3_33] : memref<10x30xf32, #tpu.memory_space<vmem>>, vector<1x24xf32>
    tpu.vector_store %arg8[%c7, %c3_33], %43 {strides = array<i32>} : memref<10x30xf32, #tpu.memory_space<vmem>>, vector<1x24xf32>,
    %c1_34 = arith.constant 1 : index
    %c0_35 = arith.constant 0 : index
    %45 = vector.load %arg7[%c1_34, %c0_35] : memref<6x48xf32, #tpu.memory_space<vmem>>, vector<4x48xf32>
    %c1_36 = arith.constant 1 : index
    %c0_37 = arith.constant 0 : index
    %c0_38 = arith.constant 0 : index
    %c0_39 = arith.constant 0 : index
    %46 = vector.load %arg2[%c1_36, %c0_37, %c0_38, %c0_39] : memref<2x2x48x24xf32, #tpu.memory_space<vmem>>, vector<1x1x48x24xf32>
    %47 = vector.shape_cast %46 : vector<1x1x48x24xf32> to vector<48x24xf32>
    %cst_40 = arith.constant dense<0.000000e+00> : vector<4x24xf32>
    %48 = tpu.matmul %45, %47, %cst_40 {dimension_numbers = #tpu.dot_dimension_numbers<[1], [0], [0], [1], [0, 0, 1, 1], [], []>} : vector<4x48xf32>, vector<48x24xf32>, vector<4x24xf32> -> vector<4x24xf32>
    %c2 = arith.constant 2 : index
    %c0_41 = arith.constant 0 : index
    %49 = vector.load %arg7[%c2, %c0_41] : memref<6x48xf32, #tpu.memory_space<vmem>>, vector<4x48xf32>
    %c1_42 = arith.constant 1 : index
    %c1_43 = arith.constant 1 : index
    %c0_44 = arith.constant 0 : index
    %c0_45 = arith.constant 0 : index
    %50 = vector.load %arg2[%c1_42, %c1_43, %c0_44, %c0_45] : memref<2x2x48x24xf32, #tpu.memory_space<vmem>>, vector<1x1x48x24xf32>
    %51 = vector.shape_cast %50 : vector<1x1x48x24xf32> to vector<48x24xf32>
    %cst_46 = arith.constant dense<0.000000e+00> : vector<4x24xf32>
    %52 = tpu.matmul %49, %51, %cst_46 {dimension_numbers = #tpu.dot_dimension_numbers<[1], [0], [0], [1], [0, 0, 1, 1], [], []>} : vector<4x48xf32>, vector<48x24xf32>, vector<4x24xf32> -> vector<4x24xf32>
    %53 = arith.addf %48, %52 : vector<4x24xf32>
    %54 = vector.broadcast %7 : vector<1x24xf32> to vector<4x24xf32>
    %55 = arith.addf %53, %54 : vector<4x24xf32>
    %cst_47 = arith.constant 0.000000e+00 : f32
    %56 = vector.broadcast %cst_47 : f32 to vector<4x24xf32>
    %57 = arith.minimumf %55, %56 : vector<4x24xf32>
    %58 = math.exp %57 : vector<4x24xf32>
    %cst_48 = arith.constant 1.000000e+00 : f32
    %59 = vector.broadcast %cst_48 : f32 to vector<4x24xf32>
    %60 = arith.cmpf oeq, %58, %59 : vector<4x24xf32>
    %cst_49 = arith.constant 1.000000e+00 : f32
    %61 = vector.broadcast %cst_49 : f32 to vector<4x24xf32>
    %62 = arith.subf %58, %61 : vector<4x24xf32>
    %63 = arith.mulf %62, %57 : vector<4x24xf32>
    %64 = math.log %58 : vector<4x24xf32>
    %65 = arith.divf %63, %64 : vector<4x24xf32>
    %66 = arith.select %60, %57, %65 : vector<4x24xi1>, vector<4x24xf32>
    %cst_50 = arith.constant 0.000000e+00 : f32
    %67 = vector.broadcast %cst_50 : f32 to vector<4x24xf32>
    %68 = arith.cmpf ogt, %55, %67 : vector<4x24xf32>
    %cst_51 = arith.constant 1.67326319 : f32
    %69 = vector.broadcast %cst_51 : f32 to vector<4x24xf32>
    %70 = arith.mulf %69, %66 : vector<4x24xf32>
    %71 = arith.select %68, %55, %70 : vector<4x24xi1>, vector<4x24xf32>
    %cst_52 = arith.constant 1.05070102 : f32
    %72 = vector.broadcast %cst_52 : f32 to vector<4x24xf32>
    %73 = arith.mulf %72, %71 : vector<4x24xf32>
    %74 = vector.extract_strided_slice %73 {offsets = [0, 0], sizes = [1, 24], strides = [1, 1]} : vector<4x24xf32> to vector<1x24xf32>
    %c2_53 = arith.constant 2 : index
    %c3_54 = arith.constant 3 : index
    %75 = vector.load %arg8[%c2_53, %c3_54] : memref<10x30xf32, #tpu.memory_space<vmem>>, vector<1x24xf32>
    tpu.vector_store %arg8[%c2_53, %c3_54], %74 {strides = array<i32>} : memref<10x30xf32, #tpu.memory_space<vmem>>, vector<1x24xf32>,
    %76 = vector.extract_strided_slice %73 {offsets = [1, 0], sizes = [1, 24], strides = [1, 1]} : vector<4x24xf32> to vector<1x24xf32>
    %c4 = arith.constant 4 : index
    %c3_55 = arith.constant 3 : index
    %77 = vector.load %arg8[%c4, %c3_55] : memref<10x30xf32, #tpu.memory_space<vmem>>, vector<1x24xf32>
    tpu.vector_store %arg8[%c4, %c3_55], %76 {strides = array<i32>} : memref<10x30xf32, #tpu.memory_space<vmem>>, vector<1x24xf32>,
    %78 = vector.extract_strided_slice %73 {offsets = [2, 0], sizes = [1, 24], strides = [1, 1]} : vector<4x24xf32> to vector<1x24xf32>
    %c6 = arith.constant 6 : index
    %c3_56 = arith.constant 3 : index
    %79 = vector.load %arg8[%c6, %c3_56] : memref<10x30xf32, #tpu.memory_space<vmem>>, vector<1x24xf32>
    tpu.vector_store %arg8[%c6, %c3_56], %78 {strides = array<i32>} : memref<10x30xf32, #tpu.memory_space<vmem>>, vector<1x24xf32>,
    %80 = vector.extract_strided_slice %73 {offsets = [3, 0], sizes = [1, 24], strides = [1, 1]} : vector<4x24xf32> to vector<1x24xf32>
    %c8_57 = arith.constant 8 : index
    %c3_58 = arith.constant 3 : index
    %81 = vector.load %arg8[%c8_57, %c3_58] : memref<10x30xf32, #tpu.memory_space<vmem>>, vector<1x24xf32>
    tpu.vector_store %arg8[%c8_57, %c3_58], %80 {strides = array<i32>} : memref<10x30xf32, #tpu.memory_space<vmem>>, vector<1x24xf32>,
    %c0_59 = arith.constant 0 : index
    %c0_60 = arith.constant 0 : index
    %82 = vector.load %arg5[%c0_59, %c0_60] : memref<1x48xf32, #tpu.memory_space<vmem>>, vector<1x48xf32>
    %c0_61 = arith.constant 0 : index
    %c0_62 = arith.constant 0 : index
    %83 = vector.load %arg8[%c0_61, %c0_62] : memref<10x30xf32, #tpu.memory_space<vmem>>, vector<8x30xf32>
    %c0_63 = arith.constant 0 : index
    %c0_64 = arith.constant 0 : index
    %c0_65 = arith.constant 0 : index
    %c0_66 = arith.constant 0 : index
    %84 = vector.load %arg4[%c0_63, %c0_64, %c0_65, %c0_66] : memref<2x2x30x48xf32, #tpu.memory_space<vmem>>, vector<1x1x30x48xf32>
    %85 = vector.shape_cast %84 : vector<1x1x30x48xf32> to vector<30x48xf32>
    %cst_67 = arith.constant dense<0.000000e+00> : vector<8x48xf32>
    %86 = tpu.matmul %83, %85, %cst_67 {dimension_numbers = #tpu.dot_dimension_numbers<[1], [0], [0], [1], [0, 0, 1, 1], [], []>} : vector<8x30xf32>, vector<30x48xf32>, vector<8x48xf32> -> vector<8x48xf32>
    %c1_68 = arith.constant 1 : index
    %c0_69 = arith.constant 0 : index
    %87 = vector.load %arg8[%c1_68, %c0_69] : memref<10x30xf32, #tpu.memory_space<vmem>>, vector<8x30xf32>
    %c0_70 = arith.constant 0 : index
    %c1_71 = arith.constant 1 : index
    %c0_72 = arith.constant 0 : index
    %c0_73 = arith.constant 0 : index
    %88 = vector.load %arg4[%c0_70, %c1_71, %c0_72, %c0_73] : memref<2x2x30x48xf32, #tpu.memory_space<vmem>>, vector<1x1x30x48xf32>
    %89 = vector.shape_cast %88 : vector<1x1x30x48xf32> to vector<30x48xf32>
    %cst_74 = arith.constant dense<0.000000e+00> : vector<8x48xf32>
    %90 = tpu.matmul %87, %89, %cst_74 {dimension_numbers = #tpu.dot_dimension_numbers<[1], [0], [0], [1], [0, 0, 1, 1], [], []>} : vector<8x30xf32>, vector<30x48xf32>, vector<8x48xf32> -> vector<8x48xf32>
    %91 = arith.addf %86, %90 : vector<8x48xf32>
    %92 = vector.broadcast %82 : vector<1x48xf32> to vector<8x48xf32>
    %93 = arith.addf %91, %92 : vector<8x48xf32>
    %cst_75 = arith.constant 0.000000e+00 : f32
    %94 = vector.broadcast %cst_75 : f32 to vector<8x48xf32>
    %95 = arith.minimumf %93, %94 : vector<8x48xf32>
    %96 = math.exp %95 : vector<8x48xf32>
    %cst_76 = arith.constant 1.000000e+00 : f32
    %97 = vector.broadcast %cst_76 : f32 to vector<8x48xf32>
    %98 = arith.cmpf oeq, %96, %97 : vector<8x48xf32>
    %cst_77 = arith.constant 1.000000e+00 : f32
    %99 = vector.broadcast %cst_77 : f32 to vector<8x48xf32>
    %100 = arith.subf %96, %99 : vector<8x48xf32>
    %101 = arith.mulf %100, %95 : vector<8x48xf32>
    %102 = math.log %96 : vector<8x48xf32>
    %103 = arith.divf %101, %102 : vector<8x48xf32>
    %104 = arith.select %98, %95, %103 : vector<8x48xi1>, vector<8x48xf32>
    %cst_78 = arith.constant 0.000000e+00 : f32
    %105 = vector.broadcast %cst_78 : f32 to vector<8x48xf32>
    %106 = arith.cmpf ogt, %93, %105 : vector<8x48xf32>
    %cst_79 = arith.constant 1.67326319 : f32
    %107 = vector.broadcast %cst_79 : f32 to vector<8x48xf32>
    %108 = arith.mulf %107, %104 : vector<8x48xf32>
    %109 = arith.select %106, %93, %108 : vector<8x48xi1>, vector<8x48xf32>
    %cst_80 = arith.constant 1.05070102 : f32
    %110 = vector.broadcast %cst_80 : f32 to vector<8x48xf32>
    %111 = arith.mulf %110, %109 : vector<8x48xf32>
    %112 = vector.extract_strided_slice %111 {offsets = [0, 0], sizes = [1, 48], strides = [1, 1]} : vector<8x48xf32> to vector<1x48xf32>
    %c0_81 = arith.constant 0 : index
    %c0_82 = arith.constant 0 : index
    %c0_83 = arith.constant 0 : index
    %113 = vector.load %arg6[%c0_81, %c0_82, %c0_83] : memref<1x16x48xf32, #tpu.memory_space<vmem>>, vector<1x1x48xf32>
    %114 = vector.shape_cast %113 : vector<1x1x48xf32> to vector<1x48xf32>
    %115 = vector.shape_cast %112 : vector<1x48xf32> to vector<1x1x48xf32>
    tpu.vector_store %arg6[%c0_81, %c0_82, %c0_83], %115 {strides = array<i32>} : memref<1x16x48xf32, #tpu.memory_space<vmem>>, vector<1x1x48xf32>,
    %116 = vector.extract_strided_slice %111 {offsets = [1, 0], sizes = [1, 48], strides = [1, 1]} : vector<8x48xf32> to vector<1x48xf32>
    %c0_84 = arith.constant 0 : index
    %c2_85 = arith.constant 2 : index
    %c0_86 = arith.constant 0 : index
    %117 = vector.load %arg6[%c0_84, %c2_85, %c0_86] : memref<1x16x48xf32, #tpu.memory_space<vmem>>, vector<1x1x48xf32>
    %118 = vector.shape_cast %117 : vector<1x1x48xf32> to vector<1x48xf32>
    %119 = vector.shape_cast %116 : vector<1x48xf32> to vector<1x1x48xf32>
    tpu.vector_store %arg6[%c0_84, %c2_85, %c0_86], %119 {strides = array<i32>} : memref<1x16x48xf32, #tpu.memory_space<vmem>>, vector<1x1x48xf32>,
    %120 = vector.extract_strided_slice %111 {offsets = [2, 0], sizes = [1, 48], strides = [1, 1]} : vector<8x48xf32> to vector<1x48xf32>
    %c0_87 = arith.constant 0 : index
    %c4_88 = arith.constant 4 : index
    %c0_89 = arith.constant 0 : index
    %121 = vector.load %arg6[%c0_87, %c4_88, %c0_89] : memref<1x16x48xf32, #tpu.memory_space<vmem>>, vector<1x1x48xf32>
    %122 = vector.shape_cast %121 : vector<1x1x48xf32> to vector<1x48xf32>
    %123 = vector.shape_cast %120 : vector<1x48xf32> to vector<1x1x48xf32>
    tpu.vector_store %arg6[%c0_87, %c4_88, %c0_89], %123 {strides = array<i32>} : memref<1x16x48xf32, #tpu.memory_space<vmem>>, vector<1x1x48xf32>,
    %124 = vector.extract_strided_slice %111 {offsets = [3, 0], sizes = [1, 48], strides = [1, 1]} : vector<8x48xf32> to vector<1x48xf32>
    %c0_90 = arith.constant 0 : index
    %c6_91 = arith.constant 6 : index
    %c0_92 = arith.constant 0 : index
    %125 = vector.load %arg6[%c0_90, %c6_91, %c0_92] : memref<1x16x48xf32, #tpu.memory_space<vmem>>, vector<1x1x48xf32>
    %126 = vector.shape_cast %125 : vector<1x1x48xf32> to vector<1x48xf32>
    %127 = vector.shape_cast %124 : vector<1x48xf32> to vector<1x1x48xf32>
    tpu.vector_store %arg6[%c0_90, %c6_91, %c0_92], %127 {strides = array<i32>} : memref<1x16x48xf32, #tpu.memory_space<vmem>>, vector<1x1x48xf32>,
    %128 = vector.extract_strided_slice %111 {offsets = [4, 0], sizes = [1, 48], strides = [1, 1]} : vector<8x48xf32> to vector<1x48xf32>
    %c0_93 = arith.constant 0 : index
    %c8_94 = arith.constant 8 : index
    %c0_95 = arith.constant 0 : index
    %129 = vector.load %arg6[%c0_93, %c8_94, %c0_95] : memref<1x16x48xf32, #tpu.memory_space<vmem>>, vector<1x1x48xf32>
    %130 = vector.shape_cast %129 : vector<1x1x48xf32> to vector<1x48xf32>
    %131 = vector.shape_cast %128 : vector<1x48xf32> to vector<1x1x48xf32>
    tpu.vector_store %arg6[%c0_93, %c8_94, %c0_95], %131 {strides = array<i32>} : memref<1x16x48xf32, #tpu.memory_space<vmem>>, vector<1x1x48xf32>,
    %132 = vector.extract_strided_slice %111 {offsets = [5, 0], sizes = [1, 48], strides = [1, 1]} : vector<8x48xf32> to vector<1x48xf32>
    %c0_96 = arith.constant 0 : index
    %c10 = arith.constant 10 : index
    %c0_97 = arith.constant 0 : index
    %133 = vector.load %arg6[%c0_96, %c10, %c0_97] : memref<1x16x48xf32, #tpu.memory_space<vmem>>, vector<1x1x48xf32>
    %134 = vector.shape_cast %133 : vector<1x1x48xf32> to vector<1x48xf32>
    %135 = vector.shape_cast %132 : vector<1x48xf32> to vector<1x1x48xf32>
    tpu.vector_store %arg6[%c0_96, %c10, %c0_97], %135 {strides = array<i32>} : memref<1x16x48xf32, #tpu.memory_space<vmem>>, vector<1x1x48xf32>,
    %136 = vector.extract_strided_slice %111 {offsets = [6, 0], sizes = [1, 48], strides = [1, 1]} : vector<8x48xf32> to vector<1x48xf32>
    %c0_98 = arith.constant 0 : index
    %c12 = arith.constant 12 : index
    %c0_99 = arith.constant 0 : index
    %137 = vector.load %arg6[%c0_98, %c12, %c0_99] : memref<1x16x48xf32, #tpu.memory_space<vmem>>, vector<1x1x48xf32>
    %138 = vector.shape_cast %137 : vector<1x1x48xf32> to vector<1x48xf32>
    %139 = vector.shape_cast %136 : vector<1x48xf32> to vector<1x1x48xf32>
    tpu.vector_store %arg6[%c0_98, %c12, %c0_99], %139 {strides = array<i32>} : memref<1x16x48xf32, #tpu.memory_space<vmem>>, vector<1x1x48xf32>,
    %140 = vector.extract_strided_slice %111 {offsets = [7, 0], sizes = [1, 48], strides = [1, 1]} : vector<8x48xf32> to vector<1x48xf32>
    %c0_100 = arith.constant 0 : index
    %c14 = arith.constant 14 : index
    %c0_101 = arith.constant 0 : index
    %141 = vector.load %arg6[%c0_100, %c14, %c0_101] : memref<1x16x48xf32, #tpu.memory_space<vmem>>, vector<1x1x48xf32>
    %142 = vector.shape_cast %141 : vector<1x1x48xf32> to vector<1x48xf32>
    %143 = vector.shape_cast %140 : vector<1x48xf32> to vector<1x1x48xf32>
    tpu.vector_store %arg6[%c0_100, %c14, %c0_101], %143 {strides = array<i32>} : memref<1x16x48xf32, #tpu.memory_space<vmem>>, vector<1x1x48xf32>,
    %c1_102 = arith.constant 1 : index
    %c0_103 = arith.constant 0 : index
    %144 = vector.load %arg8[%c1_102, %c0_103] : memref<10x30xf32, #tpu.memory_space<vmem>>, vector<8x30xf32>
    %c1_104 = arith.constant 1 : index
    %c0_105 = arith.constant 0 : index
    %c0_106 = arith.constant 0 : index
    %c0_107 = arith.constant 0 : index
    %145 = vector.load %arg4[%c1_104, %c0_105, %c0_106, %c0_107] : memref<2x2x30x48xf32, #tpu.memory_space<vmem>>, vector<1x1x30x48xf32>
    %146 = vector.shape_cast %145 : vector<1x1x30x48xf32> to vector<30x48xf32>
    %cst_108 = arith.constant dense<0.000000e+00> : vector<8x48xf32>
    %147 = tpu.matmul %144, %146, %cst_108 {dimension_numbers = #tpu.dot_dimension_numbers<[1], [0], [0], [1], [0, 0, 1, 1], [], []>} : vector<8x30xf32>, vector<30x48xf32>, vector<8x48xf32> -> vector<8x48xf32>
    %c2_109 = arith.constant 2 : index
    %c0_110 = arith.constant 0 : index
    %148 = vector.load %arg8[%c2_109, %c0_110] : memref<10x30xf32, #tpu.memory_space<vmem>>, vector<8x30xf32>
    %c1_111 = arith.constant 1 : index
    %c1_112 = arith.constant 1 : index
    %c0_113 = arith.constant 0 : index
    %c0_114 = arith.constant 0 : index
    %149 = vector.load %arg4[%c1_111, %c1_112, %c0_113, %c0_114] : memref<2x2x30x48xf32, #tpu.memory_space<vmem>>, vector<1x1x30x48xf32>
    %150 = vector.shape_cast %149 : vector<1x1x30x48xf32> to vector<30x48xf32>
    %cst_115 = arith.constant dense<0.000000e+00> : vector<8x48xf32>
    %151 = tpu.matmul %148, %150, %cst_115 {dimension_numbers = #tpu.dot_dimension_numbers<[1], [0], [0], [1], [0, 0, 1, 1], [], []>} : vector<8x30xf32>, vector<30x48xf32>, vector<8x48xf32> -> vector<8x48xf32>
    %152 = arith.addf %147, %151 : vector<8x48xf32>
    %153 = vector.broadcast %82 : vector<1x48xf32> to vector<8x48xf32>
    %154 = arith.addf %152, %153 : vector<8x48xf32>
    %cst_116 = arith.constant 0.000000e+00 : f32
    %155 = vector.broadcast %cst_116 : f32 to vector<8x48xf32>
    %156 = arith.minimumf %154, %155 : vector<8x48xf32>
    %157 = math.exp %156 : vector<8x48xf32>
    %cst_117 = arith.constant 1.000000e+00 : f32
    %158 = vector.broadcast %cst_117 : f32 to vector<8x48xf32>
    %159 = arith.cmpf oeq, %157, %158 : vector<8x48xf32>
    %cst_118 = arith.constant 1.000000e+00 : f32
    %160 = vector.broadcast %cst_118 : f32 to vector<8x48xf32>
    %161 = arith.subf %157, %160 : vector<8x48xf32>
    %162 = arith.mulf %161, %156 : vector<8x48xf32>
    %163 = math.log %157 : vector<8x48xf32>
    %164 = arith.divf %162, %163 : vector<8x48xf32>
    %165 = arith.select %159, %156, %164 : vector<8x48xi1>, vector<8x48xf32>
    %cst_119 = arith.constant 0.000000e+00 : f32
    %166 = vector.broadcast %cst_119 : f32 to vector<8x48xf32>
    %167 = arith.cmpf ogt, %154, %166 : vector<8x48xf32>
    %cst_120 = arith.constant 1.67326319 : f32
    %168 = vector.broadcast %cst_120 : f32 to vector<8x48xf32>
    %169 = arith.mulf %168, %165 : vector<8x48xf32>
    %170 = arith.select %167, %154, %169 : vector<8x48xi1>, vector<8x48xf32>
    %cst_121 = arith.constant 1.05070102 : f32
    %171 = vector.broadcast %cst_121 : f32 to vector<8x48xf32>
    %172 = arith.mulf %171, %170 : vector<8x48xf32>
    %173 = vector.extract_strided_slice %172 {offsets = [0, 0], sizes = [1, 48], strides = [1, 1]} : vector<8x48xf32> to vector<1x48xf32>
    %c0_122 = arith.constant 0 : index
    %c1_123 = arith.constant 1 : index
    %c0_124 = arith.constant 0 : index
    %174 = vector.load %arg6[%c0_122, %c1_123, %c0_124] : memref<1x16x48xf32, #tpu.memory_space<vmem>>, vector<1x1x48xf32>
    %175 = vector.shape_cast %174 : vector<1x1x48xf32> to vector<1x48xf32>
    %176 = vector.shape_cast %173 : vector<1x48xf32> to vector<1x1x48xf32>
    tpu.vector_store %arg6[%c0_122, %c1_123, %c0_124], %176 {strides = array<i32>} : memref<1x16x48xf32, #tpu.memory_space<vmem>>, vector<1x1x48xf32>,
    %177 = vector.extract_strided_slice %172 {offsets = [1, 0], sizes = [1, 48], strides = [1, 1]} : vector<8x48xf32> to vector<1x48xf32>
    %c0_125 = arith.constant 0 : index
    %c3_126 = arith.constant 3 : index
    %c0_127 = arith.constant 0 : index
    %178 = vector.load %arg6[%c0_125, %c3_126, %c0_127] : memref<1x16x48xf32, #tpu.memory_space<vmem>>, vector<1x1x48xf32>
    %179 = vector.shape_cast %178 : vector<1x1x48xf32> to vector<1x48xf32>
    %180 = vector.shape_cast %177 : vector<1x48xf32> to vector<1x1x48xf32>
    tpu.vector_store %arg6[%c0_125, %c3_126, %c0_127], %180 {strides = array<i32>} : memref<1x16x48xf32, #tpu.memory_space<vmem>>, vector<1x1x48xf32>,
    %181 = vector.extract_strided_slice %172 {offsets = [2, 0], sizes = [1, 48], strides = [1, 1]} : vector<8x48xf32> to vector<1x48xf32>
    %c0_128 = arith.constant 0 : index
    %c5_129 = arith.constant 5 : index
    %c0_130 = arith.constant 0 : index
    %182 = vector.load %arg6[%c0_128, %c5_129, %c0_130] : memref<1x16x48xf32, #tpu.memory_space<vmem>>, vector<1x1x48xf32>
    %183 = vector.shape_cast %182 : vector<1x1x48xf32> to vector<1x48xf32>
    %184 = vector.shape_cast %181 : vector<1x48xf32> to vector<1x1x48xf32>
    tpu.vector_store %arg6[%c0_128, %c5_129, %c0_130], %184 {strides = array<i32>} : memref<1x16x48xf32, #tpu.memory_space<vmem>>, vector<1x1x48xf32>,
    %185 = vector.extract_strided_slice %172 {offsets = [3, 0], sizes = [1, 48], strides = [1, 1]} : vector<8x48xf32> to vector<1x48xf32>
    %c0_131 = arith.constant 0 : index
    %c7_132 = arith.constant 7 : index
    %c0_133 = arith.constant 0 : index
    %186 = vector.load %arg6[%c0_131, %c7_132, %c0_133] : memref<1x16x48xf32, #tpu.memory_space<vmem>>, vector<1x1x48xf32>
    %187 = vector.shape_cast %186 : vector<1x1x48xf32> to vector<1x48xf32>
    %188 = vector.shape_cast %185 : vector<1x48xf32> to vector<1x1x48xf32>
    tpu.vector_store %arg6[%c0_131, %c7_132, %c0_133], %188 {strides = array<i32>} : memref<1x16x48xf32, #tpu.memory_space<vmem>>, vector<1x1x48xf32>,
    %189 = vector.extract_strided_slice %172 {offsets = [4, 0], sizes = [1, 48], strides = [1, 1]} : vector<8x48xf32> to vector<1x48xf32>
    %c0_134 = arith.constant 0 : index
    %c9 = arith.constant 9 : index
    %c0_135 = arith.constant 0 : index
    %190 = vector.load %arg6[%c0_134, %c9, %c0_135] : memref<1x16x48xf32, #tpu.memory_space<vmem>>, vector<1x1x48xf32>
    %191 = vector.shape_cast %190 : vector<1x1x48xf32> to vector<1x48xf32>
    %192 = vector.shape_cast %189 : vector<1x48xf32> to vector<1x1x48xf32>
    tpu.vector_store %arg6[%c0_134, %c9, %c0_135], %192 {strides = array<i32>} : memref<1x16x48xf32, #tpu.memory_space<vmem>>, vector<1x1x48xf32>,
    %193 = vector.extract_strided_slice %172 {offsets = [5, 0], sizes = [1, 48], strides = [1, 1]} : vector<8x48xf32> to vector<1x48xf32>
    %c0_136 = arith.constant 0 : index
    %c11 = arith.constant 11 : index
    %c0_137 = arith.constant 0 : index
    %194 = vector.load %arg6[%c0_136, %c11, %c0_137] : memref<1x16x48xf32, #tpu.memory_space<vmem>>, vector<1x1x48xf32>
    %195 = vector.shape_cast %194 : vector<1x1x48xf32> to vector<1x48xf32>
    %196 = vector.shape_cast %193 : vector<1x48xf32> to vector<1x1x48xf32>
    tpu.vector_store %arg6[%c0_136, %c11, %c0_137], %196 {strides = array<i32>} : memref<1x16x48xf32, #tpu.memory_space<vmem>>, vector<1x1x48xf32>,
    %197 = vector.extract_strided_slice %172 {offsets = [6, 0], sizes = [1, 48], strides = [1, 1]} : vector<8x48xf32> to vector<1x48xf32>
    %c0_138 = arith.constant 0 : index
    %c13 = arith.constant 13 : index
    %c0_139 = arith.constant 0 : index
    %198 = vector.load %arg6[%c0_138, %c13, %c0_139] : memref<1x16x48xf32, #tpu.memory_space<vmem>>, vector<1x1x48xf32>
    %199 = vector.shape_cast %198 : vector<1x1x48xf32> to vector<1x48xf32>
    %200 = vector.shape_cast %197 : vector<1x48xf32> to vector<1x1x48xf32>
    tpu.vector_store %arg6[%c0_138, %c13, %c0_139], %200 {strides = array<i32>} : memref<1x16x48xf32, #tpu.memory_space<vmem>>, vector<1x1x48xf32>,
    %201 = vector.extract_strided_slice %172 {offsets = [7, 0], sizes = [1, 48], strides = [1, 1]} : vector<8x48xf32> to vector<1x48xf32>
    %c0_140 = arith.constant 0 : index
    %c15 = arith.constant 15 : index
    %c0_141 = arith.constant 0 : index
    %202 = vector.load %arg6[%c0_140, %c15, %c0_141] : memref<1x16x48xf32, #tpu.memory_space<vmem>>, vector<1x1x48xf32>
    %203 = vector.shape_cast %202 : vector<1x1x48xf32> to vector<1x48xf32>
    %204 = vector.shape_cast %201 : vector<1x48xf32> to vector<1x1x48xf32>
    tpu.vector_store %arg6[%c0_140, %c15, %c0_141], %204 {strides = array<i32>} : memref<1x16x48xf32, #tpu.memory_space<vmem>>, vector<1x1x48xf32>,
    return
  }
  func.func @transform_0(%arg0: i32) -> (i32, i32, i32) {
    %c0_i32 = arith.constant 0 : i32
    %c0_i32_0 = arith.constant 0 : i32
    %c0_i32_1 = arith.constant 0 : i32
    return %arg0, %c0_i32, %c0_i32_0 : i32, i32, i32
  }
  func.func @transform_1(%arg0: i32) -> (i32, i32, i32, i32) {
    %c0_i32 = arith.constant 0 : i32
    %c0_i32_0 = arith.constant 0 : i32
    %c0_i32_1 = arith.constant 0 : i32
    %c0_i32_2 = arith.constant 0 : i32
    %c0_i32_3 = arith.constant 0 : i32
    return %c0_i32, %c0_i32_0, %c0_i32_1, %c0_i32_2 : i32, i32, i32, i32
  }
  func.func @transform_2(%arg0: i32) -> (i32, i32) {
    %c0_i32 = arith.constant 0 : i32
    %c0_i32_0 = arith.constant 0 : i32
    %c0_i32_1 = arith.constant 0 : i32
    return %c0_i32, %c0_i32_0 : i32, i32
  }
  func.func @transform_3(%arg0: i32) -> (i32, i32, i32, i32) {
    %c0_i32 = arith.constant 0 : i32
    %c0_i32_0 = arith.constant 0 : i32
    %c0_i32_1 = arith.constant 0 : i32
    %c0_i32_2 = arith.constant 0 : i32
    %c0_i32_3 = arith.constant 0 : i32
    return %c0_i32, %c0_i32_0, %c0_i32_1, %c0_i32_2 : i32, i32, i32, i32
  }
  func.func @transform_4(%arg0: i32) -> (i32, i32) {
    %c0_i32 = arith.constant 0 : i32
    %c0_i32_0 = arith.constant 0 : i32
    %c0_i32_1 = arith.constant 0 : i32
    return %c0_i32, %c0_i32_0 : i32, i32
  }
  func.func @transform_5(%arg0: i32) -> (i32, i32, i32) {
    %c0_i32 = arith.constant 0 : i32
    %c0_i32_0 = arith.constant 0 : i32
    %c0_i32_1 = arith.constant 0 : i32
    return %arg0, %c0_i32, %c0_i32_0 : i32, i32, i32
  }
}

</mosaic_0001>

<bundles_post_ra>
// kernel: tile.18
= control target key start
LH: loop header
LB: loop body
LE: loop exit
PB: predicated region body
PF: predicated region fallthrough
CT: control target
= control target key end

     0   :  { %s28_s0 = inlined_call_operand.vmem [shape: f32[3], index: 0, kind: input, shape index: {}]   ;;  %s29_s1 = inlined_call_operand.vmem [shape: f32[16,3], index: 1, kind: output, shape index: {}]  }
   0x1   :  { %v4_v0 = vld [vmem:[%s28_s0] ss:$0 sm:$0xff] }
   0x2   :  { %5 = vst [vmem:[%s29_s1] sm:$0xff] %v4_v0  ;;  %8 = vst [vmem:[%s29_s1 + $0x8] sm:$0xff] %v4_v0 }

// kernel: tile.19
= control target key start
LH: loop header
LB: loop body
LE: loop exit
PB: predicated region body
PF: predicated region fallthrough
CT: control target
= control target key end

     0   :  { %s131_s10 = smov 45   ;;  %s132_s11 = smov 39   ;;  %vm3_vm0 = vcmask 23552   ;;  %vm9_vm1 = vcmask 392552   ;;  %vm15_vm2 = vcmask 367952   ;;  %vm21_vm3 = vcmask 343352   ;;  %s207_s0 = inlined_call_operand.vmem [shape: f32[16,3], index: 0, kind: input, shape index: {}]   ;;  %s208_s1 = inlined_call_operand.vmem [shape: f32[1,48], index: 1, kind: output, shape index: {}]  }
   0x1   :  { %v101_v0 = vld [vmem:[%s207_s0 + $0xf] sm:$0x1]   ;;  %v103_v1 = vld [vmem:[%s207_s0 + $0xd] sm:$0x1]   ;;  %v102_v2 = vld [vmem:[%s207_s0 + $0xe] sm:$0x1]  }
   0x2   :  { %7 = vrot.lane.b32.xlu0 %v101_v0, %s131_s10  ;;  %19 = vrot.lane.b32.xlu1 %v103_v1, %s132_s11  ;;  %v104_v3 = vld [vmem:[%s207_s0 + $0xc] sm:$0x1]   ;;  %s133_s16 = smov 42   ;;  %s134_s17 = smov 36   ;;  %v105_v4 = vld [vmem:[%s207_s0 + $0xb] sm:$0x1]  }
   0x3   :  { %v106_v5 = vld [vmem:[%s207_s0 + $0xa] sm:$0x1]   ;;  %v2_v6 = vld [vmem:[%s207_s0] sm:$0x1]   ;;  %s135_s24 = smov 33   ;;  %s136_s25 = smov 30  }
   0x4   :  { %4 = vst.msk [vmem:[#allocation0] sm:$0x1] %vm3_vm0, %v2_v6   ;;  %v107_v7 = vld [vmem:[%s207_s0 + $0x9] sm:$0x1]   ;;  %v108_v8 = vld [vmem:[%s207_s0 + $0x8] sm:$0x1]  }
   0x5   :  { %s137_s30 = smov 27   ;;  %s138_s2 = smov 24   ;;  %v109_v9 = vld [vmem:[%s207_s0 + $0x7] sm:$0x1]   ;;  %v110_v10 = vld [vmem:[%s207_s0 + $0x6] sm:$0x1]  }
   0x6   :  { %13 = vrot.lane.b32.xlu0 %v102_v2, %s133_s16  ;;  %25 = vrot.lane.b32.xlu1 %v104_v3, %s134_s17  ;;  %s139_s7 = smov 21   ;;  %s140_s8 = smov 18   ;;  %v111_v11 = vld [vmem:[%s207_s0 + $0x5] sm:$0x1]   ;;  %v112_v12 = vld [vmem:[%s207_s0 + $0x4] sm:$0x1]  }
   0x7   :  { %s141_s13 = smov 15   ;;  %s142_s14 = smov 12   ;;  %v113_v13 = vld [vmem:[%s207_s0 + $0x3] sm:$0x1]   ;;  %v114_v14 = vld [vmem:[%s207_s0 + $0x2] sm:$0x1]  }
   0x8   :  { %s143_s19 = smov 9   ;;  %s144_s20 = smov 6   ;;  %v115_v15 = vld [vmem:[%s207_s0 + $0x1] sm:$0x1]   ;;  %vm27_vm4 = vcmask 318752   ;;  %vm33_vm5 = vcmask 294152  }
   0x9   :  { %s145_s0 = smov 3   ;;  %vm39_vm6 = vcmask 269552   ;;  %vm45_vm7 = vcmask 244952   ;;  %vm51_vm8 = vcmask 220352   ;;  %vm57_vm9 = vcmask 195752  }
   0xa   :  { %31 = vrot.lane.b32.xlu0 %v105_v4, %s135_s24  ;;  %37 = vrot.lane.b32.xlu1 %v106_v5, %s136_s25  ;;  %vm63_vm10 = vcmask 171152   ;;  %vm69_vm11 = vcmask 146552   ;;  %vm75_vm12 = vcmask 121952   ;;  %vm81_vm13 = vcmask 97352  }
   0xb   :  { %vm87_vm14 = vcmask 72752   ;;  %vm93_vm15 = vcmask 48152  }
   0xe   :  { %43 = vrot.lane.b32.xlu0 %v107_v7, %s137_s30  ;;  %49 = vrot.lane.b32.xlu1 %v108_v8, %s138_s2 }
  0x12   :  { %55 = vrot.lane.b32.xlu0 %v109_v9, %s139_s7  ;;  %61 = vrot.lane.b32.xlu1 %v110_v10, %s140_s8 }
  0x16   :  { %67 = vrot.lane.b32.xlu0 %v111_v11, %s141_s13  ;;  %73 = vrot.lane.b32.xlu1 %v112_v12, %s142_s14 }
  0x1a   :  { %79 = vrot.lane.b32.xlu0 %v113_v13, %s143_s19  ;;  %85 = vrot.lane.b32.xlu1 %v114_v14, %s144_s20 }
  0x1e   :  { %91 = vrot.lane.b32.xlu0 %v115_v15, %s145_s0 }
  0x74   :  { %v8_v16 = vpop.permute.xlu0 %7   ;;  %v20_v17 = vpop.permute.xlu1 %19  }
  0x75   :  { %10 = vst.msk [vmem:[#allocation0] sm:$0x1] %vm9_vm1, %v8_v16  }
  0x78   :  { %v14_v18 = vpop.permute.xlu0 %13   ;;  %v26_v19 = vpop.permute.xlu1 %25  }
  0x79   :  { %16 = vst.msk [vmem:[#allocation0] sm:$0x1] %vm15_vm2, %v14_v18  }
  0x7a   :  { %22 = vst.msk [vmem:[#allocation0] sm:$0x1] %vm21_vm3, %v20_v17  }
  0x7b   :  { %28 = vst.msk [vmem:[#allocation0] sm:$0x1] %vm27_vm4, %v26_v19  }
  0x7c   :  { %v32_v20 = vpop.permute.xlu0 %31   ;;  %v38_v21 = vpop.permute.xlu1 %37  }
  0x7d   :  { %34 = vst.msk [vmem:[#allocation0] sm:$0x1] %vm33_vm5, %v32_v20  }
  0x7e   :  { %40 = vst.msk [vmem:[#allocation0] sm:$0x1] %vm39_vm6, %v38_v21  }
  0x80   :  { %v44_v22 = vpop.permute.xlu0 %43   ;;  %v50_v23 = vpop.permute.xlu1 %49  }
  0x81   :  { %46 = vst.msk [vmem:[#allocation0] sm:$0x1] %vm45_vm7, %v44_v22  }
  0x82   :  { %52 = vst.msk [vmem:[#allocation0] sm:$0x1] %vm51_vm8, %v50_v23  }
  0x84   :  { %v56_v24 = vpop.permute.xlu0 %55   ;;  %v62_v25 = vpop.permute.xlu1 %61  }
  0x85   :  { %58 = vst.msk [vmem:[#allocation0] sm:$0x1] %vm57_vm9, %v56_v24  }
  0x86   :  { %64 = vst.msk [vmem:[#allocation0] sm:$0x1] %vm63_vm10, %v62_v25  }
  0x88   :  { %v68_v26 = vpop.permute.xlu0 %67   ;;  %v74_v27 = vpop.permute.xlu1 %73  }
  0x89   :  { %70 = vst.msk [vmem:[#allocation0] sm:$0x1] %vm69_vm11, %v68_v26  }
  0x8a   :  { %76 = vst.msk [vmem:[#allocation0] sm:$0x1] %vm75_vm12, %v74_v27  }
  0x8c   :  { %v80_v28 = vpop.permute.xlu0 %79   ;;  %v86_v29 = vpop.permute.xlu1 %85  }
  0x8d   :  { %82 = vst.msk [vmem:[#allocation0] sm:$0x1] %vm81_vm13, %v80_v28  }
  0x8e   :  { %88 = vst.msk [vmem:[#allocation0] sm:$0x1] %vm87_vm14, %v86_v29  }
  0x90   :  { %v92_v30 = vpop.permute.xlu0 %91  }
  0x91   :  { %94 = vst.msk [vmem:[#allocation0] sm:$0x1] %vm93_vm15, %v92_v30  }
  0x98   :  { %v98_v31 = vld [vmem:[#allocation0] sm:$0x1] }
  0x99   :  { %100 = vst [vmem:[%s208_s1] sm:$0x1] %v98_v31 }

// kernel: tile.13
= control target key start
LH: loop header
LB: loop body
LE: loop exit
PB: predicated region body
PF: predicated region fallthrough
CT: control target
= control target key end

     0   :  { %s22_s0 = inlined_call_operand.vmem [shape: f32[3], index: 0, kind: input, shape index: {}]   ;;  %s23_s1 = inlined_call_operand.vmem [shape: f32[8,3], index: 1, kind: output, shape index: {}]  }
   0x1   :  { %v4_v0 = vld [vmem:[%s22_s0] ss:$0 sm:$0xff] }
   0x2   :  { %5 = vst [vmem:[%s23_s1] sm:$0xff] %v4_v0 }

// kernel: tile.14
= control target key start
LH: loop header
LB: loop body
LE: loop exit
PB: predicated region body
PF: predicated region fallthrough
CT: control target
= control target key end

     0   :  { %s67_s10 = smov 21   ;;  %s68_s11 = smov 15   ;;  %vm3_vm0 = vcmask 23552   ;;  %vm9_vm1 = vcmask 195752   ;;  %vm15_vm2 = vcmask 171152   ;;  %vm21_vm3 = vcmask 146552   ;;  %s111_s0 = inlined_call_operand.vmem [shape: f32[8,3], index: 0, kind: input, shape index: {}]   ;;  %s112_s1 = inlined_call_operand.vmem [shape: f32[1,24], index: 1, kind: output, shape index: {}]  }
   0x1   :  { %v53_v0 = vld [vmem:[%s111_s0 + $0x7] sm:$0x1]   ;;  %v55_v1 = vld [vmem:[%s111_s0 + $0x5] sm:$0x1]   ;;  %v54_v2 = vld [vmem:[%s111_s0 + $0x6] sm:$0x1]  }
   0x2   :  { %7 = vrot.lane.b32.xlu0 %v53_v0, %s67_s10  ;;  %19 = vrot.lane.b32.xlu1 %v55_v1, %s68_s11  ;;  %v56_v3 = vld [vmem:[%s111_s0 + $0x4] sm:$0x1]   ;;  %v2_v4 = vld [vmem:[%s111_s0] sm:$0x1]   ;;  %s69_s18 = smov 18   ;;  %s70_s19 = smov 12  }
   0x3   :  { %4 = vst.msk [vmem:[#allocation0] sm:$0x1] %vm3_vm0, %v2_v4   ;;  %v57_v5 = vld [vmem:[%s111_s0 + $0x3] sm:$0x1]   ;;  %v58_v6 = vld [vmem:[%s111_s0 + $0x2] sm:$0x1]  }
   0x4   :  { %s71_s24 = smov 9   ;;  %s72_s25 = smov 6   ;;  %v59_v7 = vld [vmem:[%s111_s0 + $0x1] sm:$0x1]   ;;  %vm27_vm4 = vcmask 121952   ;;  %vm33_vm5 = vcmask 97352  }
   0x5   :  { %s73_s0 = smov 3   ;;  %vm39_vm6 = vcmask 72752   ;;  %vm45_vm7 = vcmask 48152  }
   0x6   :  { %13 = vrot.lane.b32.xlu0 %v54_v2, %s69_s18  ;;  %25 = vrot.lane.b32.xlu1 %v56_v3, %s70_s19 }
   0xa   :  { %31 = vrot.lane.b32.xlu0 %v57_v5, %s71_s24  ;;  %37 = vrot.lane.b32.xlu1 %v58_v6, %s72_s25 }
   0xe   :  { %43 = vrot.lane.b32.xlu0 %v59_v7, %s73_s0 }
  0x74   :  { %v8_v8 = vpop.permute.xlu0 %7   ;;  %v20_v9 = vpop.permute.xlu1 %19  }
  0x75   :  { %10 = vst.msk [vmem:[#allocation0] sm:$0x1] %vm9_vm1, %v8_v8  }
  0x78   :  { %v14_v10 = vpop.permute.xlu0 %13   ;;  %v26_v11 = vpop.permute.xlu1 %25  }
  0x79   :  { %16 = vst.msk [vmem:[#allocation0] sm:$0x1] %vm15_vm2, %v14_v10  }
  0x7a   :  { %22 = vst.msk [vmem:[#allocation0] sm:$0x1] %vm21_vm3, %v20_v9  }
  0x7b   :  { %28 = vst.msk [vmem:[#allocation0] sm:$0x1] %vm27_vm4, %v26_v11  }
  0x7c   :  { %v32_v12 = vpop.permute.xlu0 %31   ;;  %v38_v13 = vpop.permute.xlu1 %37  }
  0x7d   :  { %34 = vst.msk [vmem:[#allocation0] sm:$0x1] %vm33_vm5, %v32_v12  }
  0x7e   :  { %40 = vst.msk [vmem:[#allocation0] sm:$0x1] %vm39_vm6, %v38_v13  }
  0x80   :  { %v44_v14 = vpop.permute.xlu0 %43  }
  0x81   :  { %46 = vst.msk [vmem:[#allocation0] sm:$0x1] %vm45_vm7, %v44_v14  }
  0x88   :  { %v50_v15 = vld [vmem:[#allocation0] sm:$0x1] }
  0x89   :  { %52 = vst [vmem:[%s112_s1] sm:$0x1] %v50_v15 }

// kernel: decoder_forward.1
= control target key start
LH: loop header
LB: loop body
LE: loop exit
PB: predicated region body
PF: predicated region fallthrough
CT: control target
= control target key end

     0   :  { %s1421_s18 = smov 0   ;;  %s1644_s0 = inlined_call_operand.vmem [shape: f32[2,4,32], index: 0, kind: input, shape index: {}]   ;;  %s1645_s1 = inlined_call_operand.vmem [shape: f32[2,2,48,24], index: 1, kind: input, shape index: {}]   ;;  %s1646_s2 = inlined_call_operand.vmem [shape: f32[1,24], index: 2, kind: input, shape index: {}]   ;;  %s1647_s3 = inlined_call_operand.vmem [shape: f32[2,2,30,48], index: 3, kind: input, shape index: {}]   ;;  %s1648_s4 = inlined_call_operand.vmem [shape: f32[1,48], index: 4, kind: input, shape index: {}]   ;;  %s1649_s5 = inlined_call_operand.vmem [shape: f32[2,16,48], index: 5, kind: output, shape index: {}]  }
   0x1 LB: > { %s1064_s19 = sadd.s32 4294967295, %s1383_s18   ;;  %p1068_p0 = scmp.ge.s32.totalorder %s1383_s18, 1  ;;  %s1383_s18 = sphi %s1421_s18, %s15_s18  }
   0x2   : > { %p186_p1 = scmp.lt.s32.totalorder %s1383_s18, 3 }
   0x4   : > { %p187_p2 = pnand %p1068_p0, %p186_p1 }
   0x5   : > { %p213_p3 = scmp.lt.s32.totalorder (!%p187_p2), %s1064_s19, 1  ;;  %v1072_v0 = vld [vmem:[%s1645_s1 + $0x30] sm:$0xff] (!%p187_p2)  ;;  %v1073_v1 = vld [vmem:[%s1645_s1 + $0x38] sm:$0xff] (!%p187_p2)  ;;  %v237_v2 = vld [vmem:[%s1645_s1] sm:$0xff] (!%p187_p2)  ;;  %v1385_v3 = vmov (!%p187_p2), 0.0|0.0   ;;  %vm222_vm0 = vcmask (!%p187_p2), 390144  }
   0x6   : > { %190 = sbr.rel (%p187_p2) target bundleno = 821 (0x335), region = 40  ;;  %1275 = vmatprep.subr.bf16.mxu0 (!%p187_p2), %v1385_v3  ;;  %1284 = vmatprep.subr.bf16.mxu1 (!%p187_p2), %v1385_v3  ;;  %v1276_v4 = vpack.c.bf16 (!%p187_p2), %v1073_v1, %v1072_v0  ;;  %v238_v5 = vld [vmem:[%s1645_s1 + $0x8] sm:$0xff] (!%p187_p2)  ;;  %v1074_v6 = vld [vmem:[%s1645_s1 + $0x40] sm:$0xff] (!%p187_p2)  ;;  %v1386_v9 = vmov (!%p187_p2), 0.0   ;;  %v239_v10 = vld [vmem:[%s1645_s1 + $0x10] sm:$0xff] (!%p187_p2)  ;;  %vm1387_vm1 = vmmov (!%p187_p2), 0  }
   0x7   : > { %v1075_v7 = vld [vmem:[%s1645_s1 + $0x48] sm:$0xff] (!%p187_p2)  ;;  %v1285_v8 = vpack.c.bf16 (!%p187_p2), %v238_v5, %v237_v2  ;;  %223 = vst.msk [vmem:[#allocation2] sm:$0x3f] (!%p187_p2), %vm222_vm0, %v1386_v9  ;;  %v240_v11 = vld [vmem:[%s1645_s1 + $0x18] sm:$0xff] (!%p187_p2)  ;;  %1183 = vmatprep.mubr.msk.f32.mxu0 (!%p187_p2), %vm1387_vm1, %v1386_v9  ;;  %v1076_v14 = vld [vmem:[%s1645_s1 + $0x50] sm:$0xff] (!%p187_p2)  ;;  %1198 = vmatprep.mubr.msk.f32.mxu1 (!%p187_p2), %vm1387_vm1, %v1386_v9  ;;  %s1388_s25 = smov (!%p187_p2), 8  }
   0x8   : > { %1277 = vmatpush3.bf16.msra.mxu0 (!%p187_p2), %v1276_v4  ;;  %v1279_v12 = vpack.c.bf16 (!%p187_p2), %v1075_v7, %v1074_v6  ;;  %v1288_v13 = vpack.c.bf16 (!%p187_p2), %v240_v11, %v239_v10  ;;  %v1077_v15 = vld [vmem:[%s1645_s1 + $0x58] sm:$0xff] (!%p187_p2)  ;;  %v241_v16 = vld [vmem:[%s1645_s1 + $0x20] sm:$0xff] (!%p187_p2)  ;;  %v242_v17 = vld [vmem:[%s1645_s1 + $0x28] sm:$0xff] (!%p187_p2)  ;;  %vm233_vm2 = vcmask (!%p187_p2), 322624   ;;  %vm251_vm3 = vcmask (!%p187_p2), 392192  }
   0x9   : > { %1286 = vmatpush3.bf16.msra.mxu1 (!%p187_p2), %v1285_v8  ;;  %1278 = vmatprep.subr.bf16.mxu0 (!%p187_p2), %v1385_v3  ;;  %v1282_v19 = vpack.c.bf16 (!%p187_p2), %v1077_v15, %v1076_v14  ;;  %v1291_v20 = vpack.c.bf16 (!%p187_p2), %v242_v17, %v241_v16  ;;  %v1088_v22 = vld [vmem:[%s1645_s1 + $0x90] sm:$0xff] (!%p187_p2)  ;;  %v1089_v23 = vld [vmem:[%s1645_s1 + $0x98] sm:$0xff] (!%p187_p2)  ;;  %v1082_v24 = vld [vmem:[%s1645_s1 + $0x60] sm:$0xff] (!%p187_p2)  ;;  %vm224_vm4 = vcmask (!%p187_p2), 244736   ;;  %vm226_vm5 = vcmask (!%p187_p2), 238592  }
   0xa   : > { %1287 = vmatprep.subr.bf16.mxu1 (!%p187_p2), %v1385_v3  ;;  %v1083_v25 = vld [vmem:[%s1645_s1 + $0x68] sm:$0xff] (!%p187_p2)  ;;  %v1294_v26 = vpack.c.bf16 (!%p187_p2), %v1089_v23, %v1088_v22  ;;  %v1090_v28 = vld [vmem:[%s1645_s1 + $0xa0] sm:$0xff] (!%p187_p2)  ;;  %v1084_v30 = vld [vmem:[%s1645_s1 + $0x70] sm:$0xff] (!%p187_p2)  ;;  %225 = vst.msk [vmem:[#allocation3] sm:$0xff] (!%p187_p2), %vm224_vm4, %v1386_v9  ;;  %vm633_vm8 = vcmask (!%p187_p2), 1045504   ;;  %vm1390_vm9 = vmmov (!%p187_p2), 1  }
   0xb   : > { %v1303_v27 = vpack.c.bf16 (!%p187_p2), %v1083_v25, %v1082_v24  ;;  %v1091_v29 = vld [vmem:[%s1645_s1 + $0xa8] sm:$0xff] (!%p187_p2)  ;;  %v1085_v31 = vld [vmem:[%s1645_s1 + $0x78] sm:$0xff] (!%p187_p2)  ;;  %v1092_v36 = vld [vmem:[%s1645_s1 + $0xb0] sm:$0xff] (!%p187_p2)  ;;  %227 = vst.msk [vmem:[#allocation3 + $0x8] sm:$0x3] (!%p187_p2), %vm226_vm5, %v1386_v9  ;;  %vm424_vm13 = vcmask (!%p187_p2), 213016  }
   0xc   : > { %1280 = vmatpush3.bf16.msra.mxu0 (!%p187_p2), %v1279_v12  ;;  %v1297_v34 = vpack.c.bf16 (!%p187_p2), %v1091_v29, %v1090_v28  ;;  %v1306_v35 = vpack.c.bf16 (!%p187_p2), %v1085_v31, %v1084_v30  ;;  %v1093_v37 = vld [vmem:[%s1645_s1 + $0xb8] sm:$0xff] (!%p187_p2)  ;;  %v1086_v38 = vld [vmem:[%s1645_s1 + $0x80] sm:$0xff] (!%p187_p2)  ;;  %v1087_v39 = vld [vmem:[%s1645_s1 + $0x88] sm:$0xff] (!%p187_p2)  ;;  %vm426_vm14 = vcmask (!%p187_p2), 214041   ;;  %vm428_vm15 = vcmask (!%p187_p2), 215066  }
   0xd   : > { %s1653_s19 = smov (!%p213_p3, %s1064_s19), 1  ;;  %1289 = vmatpush3.bf16.msra.mxu1 %v1288_v13  ;;  %1281 = vmatprep.subr.bf16.mxu0 %v1385_v3  ;;  %v1300_v40 = vpack.c.bf16 %v1093_v37, %v1092_v36  ;;  %v1309_v41 = vpack.c.bf16 %v1087_v39, %v1086_v38  ;;  %v1080_v45 = vld [vmem:[%s1646_s2] ss:$0 sm:$0xff]  ;;  %v1098_v12 = vld [vmem:[%s1647_s3 + $0x28] sm:$0xff]  ;;  %v622_v22 = vld [vmem:[%s1647_s3 + $0x10] sm:$0xff]  ;;  %vm430_vm0 = vcmask 216091  }
   0xe   : > { %s1069_s11 = sshll.u32 %s1653_s19, 2  ;;  %1290 = vmatprep.subr.bf16.mxu1 %v1385_v3  ;;  %v1097_v11 = vld [vmem:[%s1647_s3 + $0x20] sm:$0xff]  ;;  %v621_v16 = vld [vmem:[%s1647_s3 + $0x8] sm:$0xff]  ;;  %vm1565_vm10 = vmpackc.low %vm633_vm8, %vm1390_vm9  ;;  %s1122_s16 = sshll.u32 %s1653_s19, 4  ;;  %vm809_vm5 = vcmask 387074   ;;  %vm815_vm8 = vcmask 390149  }
   0xf   : > { %s216_s20 = scalar_lea.vmem %s1644_s0, %s1069_s11  ;;  %v620_v13 = vld [vmem:[%s1647_s3] sm:$0xff]  ;;  %v1312_v15 = vpack.c.bf16 %v1098_v12, %v1097_v11  ;;  %v623_v25 = vld [vmem:[%s1647_s3 + $0x18] sm:$0x3f]  ;;  %v1112_v37 = vld [vmem:[%s1647_s3 + $0x68] sm:$0xff]  ;;  %s221_s21 = scalar_lea.vmem %s1649_s5, %s1122_s16  ;;  %vm817_vm9 = vcmask 391174  }
  0x10   : > { %v228_v18 = vld [vmem:[%s216_s20] sm:$0xf]  ;;  %1283 = vmatpush3.bf16.msra.mxu0 %v1282_v19  ;;  %v1319_v19 = vpack.c.bf16 %v621_v16, %v620_v13  ;;  %s1389_s20 = smov 3   ;;  %v1108_v39 = vld [vmem:[%s1647_s3 + $0x48] sm:$0xff] }
  0x11   : > { %230 = vrot.lane.b32.xlu0 %v228_v18, %s1388_s25  ;;  %1292 = vmatpush3.bf16.msra.mxu1 %v1291_v20  ;;  %v1099_v20 = vld [vmem:[%s1647_s3 + $0x30] sm:$0xff]  ;;  %v1111_v36 = vld [vmem:[%s1647_s3 + $0x60] sm:$0xff] }
  0x12   : > { %1293 = vmatprep.subr.bf16.mxu0 %v1385_v3  ;;  %1302 = vmatprep.subr.bf16.mxu1 %v1385_v3  ;;  %v1107_v38 = vld [vmem:[%s1647_s3 + $0x40] sm:$0xff] }
  0x83   : > { %v231_v21 = vpop.permute.xlu0 %230 }
  0x84   : > { %234 = vst.msk [vmem:[#allocation2 + $0x1] sm:$0xf] %vm233_vm2, %v231_v21  ;;  %v1100_v21 = vld [vmem:[%s1647_s3 + $0x38] sm:$0x3f]  ;;  %vm805_vm2 = vcmask 385024  }
  0x85   : > { %v1315_v23 = vpack.c.bf16 %v1100_v21, %v1099_v20 }
  0x8b   : > { %v243_v32 = vld [vmem:[#allocation2 + $0x1] sm:$0xf] }
  0x8c   : > { %v236_v33 = vld [vmem:[#allocation2] sm:$0xf]  ;;  %1184 = vmatmul.mubr.msk.f32.vlgmr.msra.gmra.mrb[0].mxu0 %vm251_vm3, %v243_v32 }
  0x8d   : > { %1199 = vmatmul.mubr.msk.f32.vlgmr.msra.gmra.mrb[0].mxu1 %vm251_vm3, %v236_v33  ;;  %1295 = vmatpush3.bf16.msra.mxu0 %v1294_v26  ;;  %v440_v42 = vld [vmem:[#allocation2 + $0x2] sm:$0xf]  ;;  %v1322_v26 = vpack.c.bf16 %v623_v25, %v622_v22 }
  0x8e   : > { %1304 = vmatpush3.bf16.msra.mxu1 %v1303_v27  ;;  %1296 = vmatprep.subr.bf16.mxu0 %v1385_v3  ;;  %v432_v43 = vld [vmem:[#allocation2 + $0x1] sm:$0xf] }
  0x8f   : > { %1305 = vmatprep.subr.bf16.mxu1 %v1385_v3  ;;  %1213 = vmatprep.mubr.msk.f32.mxu0 %vm1387_vm1, %v1386_v9 }
  0x90   : > { %1228 = vmatprep.mubr.msk.f32.mxu1 %vm1387_vm1, %v1386_v9 }
  0x91   : > { %1298 = vmatpush3.bf16.msra.mxu0 %v1297_v34 }
  0x92   : > { %1307 = vmatpush3.bf16.msra.mxu1 %v1306_v35  ;;  %1299 = vmatprep.subr.bf16.mxu0 %v1385_v3 }
  0x93   : > { %1308 = vmatprep.subr.bf16.mxu1 %v1385_v3 }
  0x95   : > { %1301 = vmatpush3.bf16.msra.mxu0 %v1300_v40  ;;  %v1326_v40 = vpack.c.bf16 %v1112_v37, %v1111_v36 }
  0x96   : > { %1310 = vmatpush3.bf16.msra.mxu1 %v1309_v41  ;;  %1311 = vmatprep.subr.bf16.mxu0 %v1385_v3  ;;  %v1333_v41 = vpack.c.bf16 %v1108_v39, %v1107_v38 }
  0x97   : > { %1318 = vmatprep.subr.bf16.mxu1 %v1385_v3 }
  0x98   : > { %1214 = vmatmul.mubr.msk.f32.vlgmr.msra.gmra.mrb[2].mxu0 %vm251_vm3, %v440_v42  ;;  %v1113_v42 = vld [vmem:[%s1647_s3 + $0x70] sm:$0xff] }
  0x99   : > { %1229 = vmatmul.mubr.msk.f32.vlgmr.msra.gmra.mrb[2].mxu1 %vm251_vm3, %v432_v43  ;;  %1239 = vmatprep.mubr.msk.f32.mxu0 %vm1387_vm1, %v1386_v9  ;;  %v1114_v43 = vld [vmem:[%s1647_s3 + $0x78] sm:$0x3f]  ;;  %vm807_vm3 = vcmask 386049  }
  0x9a   : > { %1250 = vmatprep.mubr.msk.f32.mxu1 %vm1387_vm1, %v1386_v9  ;;  %1313 = vmatpush3.bf16.msra.mxu0 %v1312_v15 }
  0x9b   : > { %1320 = vmatpush3.bf16.msra.mxu1 %v1319_v19  ;;  %1314 = vmatprep.subr.bf16.mxu0 %v1385_v3 }
  0x9c   : > { %1321 = vmatprep.subr.bf16.mxu1 %v1385_v3 }
  0x9e   : > { %1317 = vmatpush3.bf16.msk.msra.mxu0 %vm1565_vm10, %v1315_v23 }
  0x9f   : > { %1324 = vmatpush3.bf16.msk.msra.mxu1 %vm1565_vm10, %v1322_v26  ;;  %1325 = vmatprep.subr.bf16.mxu0 %v1385_v3 }
  0xa0   : > { %1332 = vmatprep.subr.bf16.mxu1 %v1385_v3 }
 0x15f   : > { %v321_v44 = vpop.f32.mrb[0].mxu0 }
 0x160   : > { %v394_v46 = vpop.f32.mrb[0].mxu1  ;;  %v1185_v48 = vpop.f32.mrb[1].mxu0 }
 0x161   : > { %v395_v47 = vadd.f32 %v394_v46, %v321_v44  ;;  %v1200_v49 = vpop.f32.mrb[1].mxu1  ;;  %v1109_v44 = vld [vmem:[%s1647_s3 + $0x50] sm:$0xff]  ;;  %v1329_v48 = vpack.c.bf16 %v1114_v43, %v1113_v42 }
 0x163   : > { %v404_v50 = vadd.f32 %v1080_v45, %v395_v47 }
 0x165   : > { %v405_v51 = vmin.f32 %v404_v50, 0.0  ;;  %vm416_vm7 = vcmp.gt.f32.partialorder %v404_v50, 0.0 }
 0x167   : > { %v406_v52 = vmul.f32 1.442695, %v405_v51 }
 0x169   : > { %1353 = vpow2.f32 %v406_v52 }
 0x16b   : > { %v517_v53 = vpop.f32.mrb[2].mxu0 }
 0x16c   : > { %v590_v54 = vpop.f32.mrb[2].mxu1  ;;  %v1215_v56 = vpop.f32.mrb[3].mxu0 }
 0x16d   : > { %v591_v55 = vadd.f32 %v590_v54, %v517_v53  ;;  %v1230_v57 = vpop.f32.mrb[3].mxu1 }
 0x16f   : > { %v594_v58 = vadd.f32 %v1080_v45, %v591_v55  ;;  %v1110_v45 = vld [vmem:[%s1647_s3 + $0x58] sm:$0x3f] }
 0x170   : > { %v1336_v49 = vpack.c.bf16 %v1110_v45, %v1109_v44 }
 0x171   : > { %v595_v59 = vmin.f32 %v594_v58, 0.0  ;;  %vm606_vm12 = vcmp.gt.f32.partialorder %v594_v58, 0.0 }
 0x173   : > { %v1354_v60 = vpop.eup %1353  ;;  %v596_v61 = vmul.f32 1.442695, %v595_v59 }
 0x174   : > { %1355 = vlog2.f32 %v1354_v60  ;;  %v1081_v1 = vadd.f32 -1.0, %v1354_v60  ;;  %vm408_vm6 = vcmp.eq.f32.partialorder %v1354_v60, 1.0 }
 0x175   : > { %1357 = vpow2.f32 %v596_v61 }
 0x176   : > { %v410_v4 = vmul.f32 %v1081_v1, %v405_v51 }
 0x17e   : > { %v1356_v62 = vpop.eup %1355 }
 0x17f   : > { %v1358_v63 = vpop.eup %1357  ;;  %v412_v0 = vmul.f32 0.6931472, %v1356_v62 }
 0x180   : > { %1359 = vlog2.f32 %v1358_v63  ;;  %v1096_v17 = vadd.f32 -1.0, %v1358_v63  ;;  %vm598_vm11 = vcmp.eq.f32.partialorder %v1358_v63, 1.0 }
 0x181   : > { %1361 = vrcp.f32 %v412_v0 }
 0x182   : > { %v600_v27 = vmul.f32 %v1096_v17, %v595_v59 }
 0x18a   : > { %v1360_v2 = vpop.eup %1359 }
 0x18b   : > { %v1362_v5 = vpop.eup %1361  ;;  %v602_v6 = vmul.f32 0.6931472, %v1360_v2 }
 0x18c   : > { %v414_v7 = vmul.f32 %v1362_v5, %v410_v4 }
 0x18d   : > { %1363 = vrcp.f32 %v602_v6 }
 0x18e   : > { %v415_v8 = vsel %vm408_vm6, %v405_v51, %v414_v7  ;;  %vm811_vm6 = vcmask 388099  }
 0x18f   : > { %v417_v10 = vmul.f32 1.6732632, %v415_v8 }
 0x191   : > { %v418_v14 = vsel %vm416_vm7, %v404_v50, %v417_v10  ;;  %vm813_vm7 = vcmask 389124  }
 0x192   : > { %v419_v18 = vmul.f32 1.050701, %v418_v14 }
 0x194   : > { %421 = vrot.lane.b32.xlu0 %v419_v18, %s1389_s20 }
 0x197   : > { %v1364_v28 = vpop.eup %1363 }
 0x198   : > { %v604_v29 = vmul.f32 %v1364_v28, %v600_v27 }
 0x19a   : > { %v605_v30 = vsel %vm598_vm11, %v595_v59, %v604_v29 }
 0x19b   : > { %v607_v31 = vmul.f32 1.6732632, %v605_v30 }
 0x19d   : > { %v608_v32 = vsel %vm606_vm12, %v594_v58, %v607_v31 }
 0x19e   : > { %v609_v33 = vmul.f32 1.050701, %v608_v32 }
 0x1a0   : > { %611 = vrot.lane.b32.xlu1 %v609_v33, %s1389_s20 }
 0x206   : > { %v422_v34 = vpop.permute.xlu0 %421 }
 0x207   : > { %425 = vst.msk [vmem:[#allocation3 + $0x1] sm:$0x1] %vm424_vm13, %v422_v34 }
 0x208   : > { %427 = vst.msk [vmem:[#allocation3 + $0x2] sm:$0x2] %vm426_vm14, %v422_v34 }
 0x209   : > { %429 = vst.msk [vmem:[#allocation3 + $0x3] sm:$0x4] %vm428_vm15, %v422_v34 }
 0x20a   : > { %431 = vst.msk [vmem:[#allocation3 + $0x4] sm:$0x8] %vm430_vm0, %v422_v34 }
 0x212   : > { %v612_v35 = vpop.permute.xlu1 %611 }
 0x213   : > { %614 = vst.msk [vmem:[#allocation3 + $0x2] sm:$0x1] %vm424_vm13, %v612_v35 }
 0x214   : > { %615 = vst.msk [vmem:[#allocation3 + $0x3] sm:$0x2] %vm426_vm14, %v612_v35 }
 0x215   : > { %616 = vst.msk [vmem:[#allocation3 + $0x4] sm:$0x4] %vm428_vm15, %v612_v35 }
 0x216   : > { %617 = vst.msk [vmem:[#allocation3 + $0x5] sm:$0x8] %vm430_vm0, %v612_v35 }
 0x21c   : > { %v619_v47 = vld [vmem:[#allocation3] sm:$0xff] }
 0x21d   : > { %v624_v46 = vld [vmem:[#allocation3 + $0x1] sm:$0xff]  ;;  %1251 = vmatmul.mubr.msk.f32.vlgmr.msra.gmra.mrb[4].mxu1 %vm224_vm4, %v619_v47 }
 0x21e   : > { %1240 = vmatmul.mubr.msk.f32.vlgmr.msra.gmra.mrb[4].mxu0 %vm224_vm4, %v624_v46  ;;  %1334 = vmatpush3.bf16.msra.mxu1 %v1333_v41  ;;  %v827_v50 = vld [vmem:[#allocation3 + $0x2] sm:$0xff] }
 0x21f   : > { %1327 = vmatpush3.bf16.msra.mxu0 %v1326_v40  ;;  %1335 = vmatprep.subr.bf16.mxu1 %v1385_v3 }
 0x220   : > { %1328 = vmatprep.subr.bf16.mxu0 %v1385_v3  ;;  %1261 = vmatprep.mubr.msk.f32.mxu0 %vm1387_vm1, %v1386_v9  ;;  %v1105_v3 = vld [vmem:[%s1648_s4] ss:$0 sm:$0xff] }
 0x221   : > { %1272 = vmatprep.mubr.msk.f32.mxu1 %vm1387_vm1, %v1386_v9 }
 0x222   : > { %1338 = vmatpush3.bf16.msk.msra.mxu1 %vm1565_vm10, %v1336_v49 }
 0x223   : > { %1331 = vmatpush3.bf16.msk.msra.mxu0 %vm1565_vm10, %v1329_v48  ;;  %vm819_vm10 = vcmask 392199  }
 0x225   : > { %1273 = vmatmul.mubr.msk.f32.vlgmr.msra.gmra.mrb[6].mxu1 %vm224_vm4, %v624_v46 }
 0x226   : > { %1262 = vmatmul.mubr.msk.f32.vlgmr.msra.gmra.mrb[6].mxu0 %vm224_vm4, %v827_v50 }
 0x2f0   : > { %v779_v52 = vpop.f32.mrb[4].mxu1 }
 0x2f1   : > { %v703_v51 = vpop.f32.mrb[4].mxu0  ;;  %v1252_v9 = vpop.f32.mrb[5].mxu1 }
 0x2f2   : > { %v780_v53 = vadd.f32 %v779_v52, %v703_v51  ;;  %v1241_v54 = vpop.f32.mrb[5].mxu0 }
 0x2f4   : > { %v789_v55 = vadd.f32 %v1105_v3, %v780_v53 }
 0x2f6   : > { %v790_v56 = vmin.f32 %v789_v55, 0.0  ;;  %vm801_vm4 = vcmp.gt.f32.partialorder %v789_v55, 0.0 }
 0x2f8   : > { %v791_v57 = vmul.f32 1.442695, %v790_v56  ;;  %v981_v59 = vpop.f32.mrb[6].mxu1 }
 0x2f9   : > { %v905_v58 = vpop.f32.mrb[6].mxu0  ;;  %v1274_v62 = vpop.f32.mrb[7].mxu1 }
 0x2fa   : > { %1365 = vpow2.f32 %v791_v57  ;;  %v982_v60 = vadd.f32 %v981_v59, %v905_v58  ;;  %v1263_v61 = vpop.f32.mrb[7].mxu0 }
 0x2fc   : > { %v985_v63 = vadd.f32 %v1105_v3, %v982_v60 }
 0x2fe   : > { %v986_v0 = vmin.f32 %v985_v63, 0.0  ;;  %vm997_vm12 = vcmp.gt.f32.partialorder %v985_v63, 0.0 }
 0x300   : > { %v987_v1 = vmul.f32 1.442695, %v986_v0 }
 0x302   : > { %1367 = vpow2.f32 %v987_v1 }
 0x304   : > { %v1366_v2 = vpop.eup %1365 }
 0x305   : > { %1369 = vlog2.f32 %v1366_v2  ;;  %v1106_v8 = vadd.f32 -1.0, %v1366_v2  ;;  %vm793_vm1 = vcmp.eq.f32.partialorder %v1366_v2, 1.0 }
 0x307   : > { %v795_v11 = vmul.f32 %v1106_v8, %v790_v56 }
 0x30c   : > { %v1368_v4 = vpop.eup %1367 }
 0x30d   : > { %1371 = vlog2.f32 %v1368_v4  ;;  %v1119_v15 = vadd.f32 -1.0, %v1368_v4  ;;  %vm989_vm11 = vcmp.eq.f32.partialorder %v1368_v4, 1.0 }
 0x30f   : > { %v1370_v5 = vpop.eup %1369  ;;  %v991_v19 = vmul.f32 %v1119_v15, %v986_v0 }
 0x310   : > { %v797_v6 = vmul.f32 0.6931472, %v1370_v5 }
 0x312   : > { %1373 = vrcp.f32 %v797_v6 }
 0x317   : > { %v1372_v7 = vpop.eup %1371 }
 0x318   : > { %v993_v10 = vmul.f32 0.6931472, %v1372_v7 }
 0x31a   : > { %1375 = vrcp.f32 %v993_v10 }
 0x31c   : > { %v1374_v12 = vpop.eup %1373 }
 0x31d   : > { %v799_v13 = vmul.f32 %v1374_v12, %v795_v11 }
 0x31f   : > { %v800_v14 = vsel %vm793_vm1, %v790_v56, %v799_v13 }
 0x320   : > { %v802_v16 = vmul.f32 1.6732632, %v800_v14 }
 0x322   : > { %v803_v17 = vsel %vm801_vm4, %v789_v55, %v802_v16 }
 0x323   : > { %v804_v18 = vmul.f32 1.050701, %v803_v17 }
 0x324   : > { %v1376_v20 = vpop.eup %1375 }
 0x325   : > { %806 = vst.msk [vmem:[%s221_s21] sm:$0x1] %vm805_vm2, %v804_v18  ;;  %v995_v21 = vmul.f32 %v1376_v20, %v991_v19 }
 0x326   : > { %808 = vst.msk [vmem:[%s221_s21 + $0x1] sm:$0x2] %vm807_vm3, %v804_v18 }
 0x327   : > { %810 = vst.msk [vmem:[%s221_s21 + $0x2] sm:$0x4] %vm809_vm5, %v804_v18  ;;  %v996_v22 = vsel %vm989_vm11, %v986_v0, %v995_v21 }
 0x328   : > { %812 = vst.msk [vmem:[%s221_s21 + $0x3] sm:$0x8] %vm811_vm6, %v804_v18  ;;  %v998_v23 = vmul.f32 1.6732632, %v996_v22 }
 0x329   : > { %814 = vst.msk [vmem:[%s221_s21 + $0x4] sm:$0x10] %vm813_vm7, %v804_v18 }
 0x32a   : > { %816 = vst.msk [vmem:[%s221_s21 + $0x5] sm:$0x20] %vm815_vm8, %v804_v18  ;;  %v999_v24 = vsel %vm997_vm12, %v985_v63, %v998_v23 }
 0x32b   : > { %818 = vst.msk [vmem:[%s221_s21 + $0x6] sm:$0x40] %vm817_vm9, %v804_v18  ;;  %v1000_v25 = vmul.f32 1.050701, %v999_v24 }
 0x32c   : > { %820 = vst.msk [vmem:[%s221_s21 + $0x7] sm:$0x80] %vm819_vm10, %v804_v18 }
 0x32d   : > { %1001 = vst.msk [vmem:[%s221_s21 + $0x1] sm:$0x1] %vm805_vm2, %v1000_v25 }
 0x32e   : > { %1002 = vst.msk [vmem:[%s221_s21 + $0x2] sm:$0x2] %vm807_vm3, %v1000_v25 }
 0x32f   : > { %1003 = vst.msk [vmem:[%s221_s21 + $0x3] sm:$0x4] %vm809_vm5, %v1000_v25 }
 0x330   : > { %1004 = vst.msk [vmem:[%s221_s21 + $0x4] sm:$0x8] %vm811_vm6, %v1000_v25 }
 0x331   : > { %1005 = vst.msk [vmem:[%s221_s21 + $0x5] sm:$0x10] %vm813_vm7, %v1000_v25 }
 0x332   : > { %1006 = vst.msk [vmem:[%s221_s21 + $0x6] sm:$0x20] %vm815_vm8, %v1000_v25 }
 0x333   : > { %1007 = vst.msk [vmem:[%s221_s21 + $0x7] sm:$0x40] %vm817_vm9, %v1000_v25 }
 0x334   : > { %1008 = vst.msk [vmem:[%s221_s21 + $0x8] sm:$0x80] %vm819_vm10, %v1000_v25 }
 0x335 PF: > { %s15_s18 = sadd.s32 1, %s1383_s18  }
 0x336   : > { %p12_p4 = scmp.ge.s32.totalorder %s15_s18, 4  }
 0x338   :  { %14 = sbr.rel (!%p12_p4) target bundleno = 1 (0x1), region = 76 }

</bundles_post_ra>
